<compile_context>
chip_gen: v6e
topology: v6e:2x2x1
jax: 0.10.0
libtpu: 0.0.40
codegen_flags: <defaults>
</compile_context>

<pallas_src>
import functools

import jax
import jax.numpy as jnp
from jax.experimental import pallas as pl
from jax.experimental.pallas import tpu as pltpu

F_ENC = 1280          # EfficientNet-b0 feature width
BN_EPS = 1e-5
H1, H2 = 512, 128     # head hidden widths


# ----------------------------------------------------------------------------
# Fused kernel: pooled stand-in encoder + folded head
# grid = (batch tiles [parallel], spatial tiles [arbitrary / reduction, last])
# ----------------------------------------------------------------------------
def _fused_kernel(x_ref, wc_ref, bc_ref, w2_ref, b2_ref, w3_ref, b3_ref,
                  o_ref, acc_ref, *, inv_hw):
    # x_ref  : (tb, C, thw) f32 streaming input tile (double-buffered)
    # wc_ref : (C, 512)  encoder -> Linear1 -> BN1 fully folded weight (f32)
    # w2_ref : (512, 128) Linear2 with BN2 folded in
    # acc_ref: (tb, C) f32 partial spatial sums, resident across the reduction
    s = pl.program_id(1)

    @pl.when(s == 0)
    def _():
        acc_ref[...] = jnp.zeros_like(acc_ref)

    # Partial global-average-pool: lane-axis (XLU) reduction of this HW tile.
    acc_ref[...] += jnp.sum(x_ref[...], axis=-1)

    @pl.when(s == pl.num_programs(1) - 1)
    def _():
        pooled = acc_ref[...] * inv_hw                         # (tb, C) f32
        # Head: all matmuls f32 on the MXU with f32 accumulation.  Encoder,
        # Linear1 and eval-mode BN1 are folded into wc/bc; BN2 into w2/b2;
        # epilogue is just bias-add + ReLU.
        h = jnp.maximum(
            jnp.dot(pooled, wc_ref[...],
                    preferred_element_type=jnp.float32) + bc_ref[...], 0.0)
        h = jnp.maximum(
            jnp.dot(h, w2_ref[...],
                    preferred_element_type=jnp.float32) + b2_ref[...], 0.0)
        out = jnp.dot(h, w3_ref[...],
                      preferred_element_type=jnp.float32) + b3_ref[...]
        # n_cls=2 -> masked partial store; single vreg, negligible.
        o_ref[...] = out.astype(o_ref.dtype)


# ----------------------------------------------------------------------------
# Tiling helpers
# ----------------------------------------------------------------------------
def _pick_batch_tile(B):
    if B % 8:
        return B                       # small / ragged batch: one tile
    for tb in (128, 64, 32, 16, 8):    # sublane-friendly multiples of 8
        if B % tb == 0:
            return tb
    return B


def _pick_hw_tile(hw, tb, c, budget_bytes=8 << 20):
    # Largest multiple-of-128 divisor of hw whose DOUBLE-BUFFERED f32 x block
    # fits the budget; sized with v7x (64 MiB physical / 32 MiB scoped VMEM)
    # in mind and therefore safe on v5e/v6e as well.
    if hw % 128 != 0:
        return hw                      # block equals full dim -> always legal
    best = 128
    for t in range(128, hw + 1, 128):
        if hw % t == 0 and 2 * tb * c * t * 4 <= budget_bytes:
            best = t
    return best


# ----------------------------------------------------------------------------
# Wrapper
# ----------------------------------------------------------------------------
@functools.partial(jax.jit, static_argnames=("hw_tile",))
def video_frames_joint(x, params, hw_tile=None):
    """x: [B, C, H, W] f32 (NCHW), C = 3 * n_img  ->  logits [B, n_cls] f32."""
    wc, bc, w2f, b2f, w3, b3 = params
    B, C, H, W = x.shape
    hw = H * W
    n_cls = w3.shape[1]

    # Contiguous reshape only — no transposes, no extra HBM relayout.
    x3 = x.reshape(B, C, hw)

    tb = _pick_batch_tile(B)
    thw = hw_tile if hw_tile is not None else _pick_hw_tile(hw, tb, C)
    grid = (B // tb, hw // thw)        # reduction (spatial) axis last

    kernel = functools.partial(_fused_kernel, inv_hw=1.0 / hw)

    def _resident(a):
        # Constant block index across the whole grid: DMA'd once, stays in
        # VMEM.  Post-folding the weights total <0.5 MiB, so default 2-deep
        # buffering costs nothing worth fighting (no pl.Buffered(1) needed).
        nd = a.ndim
        return pl.BlockSpec(a.shape, lambda b, s, _nd=nd: (0,) * _nd)

    return pl.pallas_call(
        kernel,
        out_shape=jax.ShapeDtypeStruct((B, n_cls), jnp.float32),
        grid=grid,
        in_specs=[pl.BlockSpec((tb, C, thw), lambda b, s: (b, 0, s)),
                  _resident(wc), _resident(bc),
                  _resident(w2f), _resident(b2f),
                  _resident(w3), _resident(b3)],
        out_specs=pl.BlockSpec((tb, n_cls), lambda b, s: (b, 0)),
        scratch_shapes=[pltpu.VMEM((tb, C), jnp.float32)],
        compiler_params=pltpu.CompilerParams(
            dimension_semantics=("parallel", "arbitrary")),
    )(x3, wc, bc, w2f, b2f, w3, b3)


# ----------------------------------------------------------------------------
# Deterministic parameter init (synthetic; matches module shapes) + folding
# ----------------------------------------------------------------------------
def init_raw_params(key, in_channels=12, num_classes=2):
    n_img = in_channels // 3
    D = n_img * F_ENC
    ks = jax.random.split(key, 16)

    def lin(kw, kb, fan_in, fan_out):
        bound = (1.0 / fan_in) ** 0.5
        w = jax.random.uniform(kw, (fan_in, fan_out), jnp.float32, -bound, bound)
        b = jax.random.uniform(kb, (1, fan_out), jnp.float32, -bound, bound)
        return w, b

    def bn(kg, kb, km, kv, dim):
        gamma = 1.0 + 0.1 * jax.random.normal(kg, (1, dim), jnp.float32)
        beta = 0.1 * jax.random.normal(kb, (1, dim), jnp.float32)
        r_mean = 0.1 * jax.random.normal(km, (1, dim), jnp.float32)
        r_var = jnp.abs(jax.random.normal(kv, (1, dim), jnp.float32)) + 0.5
        scale = gamma / jnp.sqrt(r_var + BN_EPS)   # eval-mode BN as scale/shift
        shift = beta - r_mean * scale
        return scale, shift

    w_enc, b_enc = lin(ks[0], ks[1], 3, F_ENC)     # shared stand-in encoder
    w1, b1 = lin(ks[2], ks[3], D, H1)
    s1, t1 = bn(ks[4], ks[5], ks[6], ks[7], H1)
    w2, b2 = lin(ks[8], ks[9], H1, H2)
    s2, t2 = bn(ks[10], ks[11], ks[12], ks[13], H2)
    w3, b3 = lin(ks[14], ks[15], H2, num_classes)
    return (w_enc, b_enc, w1, b1, s1, t1, w2, b2, s2, t2, w3, b3)


def fold_params(raw, in_channels=12):
    """One-time folding OUTSIDE the jitted forward:
       * shared linear encoder -> Linear1 (exact; preserves torch.cat(dim=1)
         column ordering without ever materializing a block-diagonal weight)
       * eval-mode BN1 -> Linear1 and BN2 -> Linear2 (per-column scale/shift)
    Cuts the dominant per-call HBM weight transfer (~10 MiB f32 w1) to ~24 KB.
    """
    (w_enc, b_enc, w1, b1, s1, t1, w2, b2, s2, t2, w3, b3) = raw
    n_img = in_channels // 3
    w1_3d = w1.reshape(n_img, F_ENC, H1)           # w1 rows in cat(dim=1) order
    wc = jnp.einsum('cf,nfo->nco', w_enc, w1_3d).reshape(in_channels, H1)
    bc = b_enc @ w1_3d.sum(axis=0) + b1            # (1, H1)
    wc = wc * s1
    bc = bc * s1 + t1
    w2f = w2 * s2
    b2f = b2 * s2 + t2
    return (wc, bc, w2f, b2f, w3, b3)


# ----------------------------------------------------------------------------
# Pure-JAX reference replicating the original module structure (per-frame
# encoder loop, cat(dim=1), Linear/BN/ReLU head) on the UN-folded params.
# ----------------------------------------------------------------------------
def reference_forward(x, raw):
    (w_enc, b_enc, w1, b1, s1, t1, w2, b2, s2, t2, w3, b3) = raw
    B, C, H, W = x.shape
    n_img = C // 3
    feats = []
    for i in range(n_img):
        img = x[:, 3 * i:3 * i + 3, :, :]
        pooled = img.mean(axis=(2, 3))             # stand-in encoder GAP
        feats.append(pooled @ w_enc + b_enc)
    f = jnp.concatenate(feats, axis=1)             # torch.cat(dim=1)
    h = jnp.maximum((f @ w1 + b1) * s1 + t1, 0.0)
    h = jnp.maximum((h @ w2 + b2) * s2 + t2, 0.0)
    return h @ w3 + b3


# ----------------------------------------------------------------------------
if __name__ == "__main__":
    key = jax.random.PRNGKey(0)
    k_x, k_p = jax.random.split(key)

    B, C, H, W = 2, 12, 16, 16          # in_channels=12 -> 4 frames of 3 channels
    num_classes = 2
    x = jax.random.normal(k_x, (B, C, H, W), jnp.float32)

    raw = init_raw_params(k_p, in_channels=C, num_classes=num_classes)
    params = fold_params(raw, in_channels=C)   # folded once, outside the forward

    # hw_tile=128 forces two spatial grid steps at this toy resolution so the
    # partial-sum accumulator path is exercised; at real resolutions leave it
    # None and the auto-picker sizes the tile for VMEM (v7x budget).
    out = jax.block_until_ready(video_frames_joint(x, params, hw_tile=128))

    assert out.shape == (B, num_classes), out.shape
    assert out.dtype == jnp.float32

    ref = reference_forward(x, raw)
    assert jnp.allclose(out, ref, rtol=1e-3, atol=1e-3), (
        float(jnp.max(jnp.abs(out - ref))))
    print("KERNEL_OK")
</pallas_src>

<mosaic_0001>
module attributes {stable_mosaic.version = 11 : i64} {
  func.func @_fused_kernel(%arg0: i32, %arg1: i32, %arg2: memref<2x12x128xf32, #tpu.memory_space<vmem>>, %arg3: memref<12x512xf32, #tpu.memory_space<vmem>>, %arg4: memref<1x512xf32, #tpu.memory_space<vmem>>, %arg5: memref<512x128xf32, #tpu.memory_space<vmem>>, %arg6: memref<1x128xf32, #tpu.memory_space<vmem>>, %arg7: memref<128x2xf32, #tpu.memory_space<vmem>>, %arg8: memref<1x2xf32, #tpu.memory_space<vmem>>, %arg9: memref<2x2xf32, #tpu.memory_space<vmem>>, %arg10: memref<2x12xf32, #tpu.memory_space<vmem>>) attributes {dimension_semantics = [#tpu.dimension_semantics<parallel>, #tpu.dimension_semantics<arbitrary>], iteration_bounds = array<i64: 1, 2>, scalar_prefetch = 0 : i64, scratch_operands = 1 : i64, tpu.core_type = #tpu.core_type<tc>, window_params = [{transform_indices = @transform_0, window_bounds = array<i64: 2, 12, 128>}, {pipeline_mode = #tpu.pipeline_mode<synchronous>, transform_indices = @transform_1, window_bounds = array<i64: 12, 512>}, {pipeline_mode = #tpu.pipeline_mode<synchronous>, transform_indices = @transform_2, window_bounds = array<i64: 1, 512>}, {pipeline_mode = #tpu.pipeline_mode<synchronous>, transform_indices = @transform_3, window_bounds = array<i64: 512, 128>}, {pipeline_mode = #tpu.pipeline_mode<synchronous>, transform_indices = @transform_4, window_bounds = array<i64: 1, 128>}, {pipeline_mode = #tpu.pipeline_mode<synchronous>, transform_indices = @transform_5, window_bounds = array<i64: 128, 2>}, {pipeline_mode = #tpu.pipeline_mode<synchronous>, transform_indices = @transform_6, window_bounds = array<i64: 1, 2>}, {transform_indices = @transform_7, window_bounds = array<i64: 2, 2>}]} {
    %c0_i32 = arith.constant 0 : i32
    %0 = arith.cmpi eq, %arg1, %c0_i32 : i32
    %1 = arith.extui %0 : i1 to i32
    %c0_i32_0 = arith.constant 0 : i32
    %2 = arith.cmpi ne, %1, %c0_i32_0 : i32
    scf.if %2 {
      %cst_8 = arith.constant 0.000000e+00 : f32
      %11 = vector.broadcast %cst_8 : f32 to vector<2x12xf32>
      %c0_9 = arith.constant 0 : index
      %c0_10 = arith.constant 0 : index
      %12 = vector.load %arg10[%c0_9, %c0_10] : memref<2x12xf32, #tpu.memory_space<vmem>>, vector<2x12xf32>
      tpu.vector_store %arg10[%c0_9, %c0_10], %11 {strides = array<i32>} : memref<2x12xf32, #tpu.memory_space<vmem>>, vector<2x12xf32>,
    } else {
    }
    %c0 = arith.constant 0 : index
    %c0_1 = arith.constant 0 : index
    %3 = vector.load %arg10[%c0, %c0_1] : memref<2x12xf32, #tpu.memory_space<vmem>>, vector<2x12xf32>
    %c0_2 = arith.constant 0 : index
    %c0_3 = arith.constant 0 : index
    %c0_4 = arith.constant 0 : index
    %4 = vector.load %arg2[%c0_2, %c0_3, %c0_4] : memref<2x12x128xf32, #tpu.memory_space<vmem>>, vector<2x12x128xf32>
    %cst = arith.constant dense<0.000000e+00> : vector<2x12xf32>
    %5 = vector.multi_reduction <add>, %4, %cst [2] : vector<2x12x128xf32> to vector<2x12xf32>
    %6 = arith.addf %3, %5 : vector<2x12xf32>
    %c0_5 = arith.constant 0 : index
    %c0_6 = arith.constant 0 : index
    %7 = vector.load %arg10[%c0_5, %c0_6] : memref<2x12xf32, #tpu.memory_space<vmem>>, vector<2x12xf32>
    tpu.vector_store %arg10[%c0_5, %c0_6], %6 {strides = array<i32>} : memref<2x12xf32, #tpu.memory_space<vmem>>, vector<2x12xf32>,
    %c1_i32 = arith.constant 1 : i32
    %8 = arith.cmpi eq, %arg1, %c1_i32 : i32
    %9 = arith.extui %8 : i1 to i32
    %c0_i32_7 = arith.constant 0 : i32
    %10 = arith.cmpi ne, %9, %c0_i32_7 : i32
    scf.if %10 {
      %c0_8 = arith.constant 0 : index
      %c0_9 = arith.constant 0 : index
      %11 = vector.load %arg10[%c0_8, %c0_9] : memref<2x12xf32, #tpu.memory_space<vmem>>, vector<2x12xf32>
      %cst_10 = arith.constant 3.906250e-03 : f32
      %12 = vector.broadcast %cst_10 : f32 to vector<2x12xf32>
      %13 = arith.mulf %11, %12 : vector<2x12xf32>
      %c0_11 = arith.constant 0 : index
      %c0_12 = arith.constant 0 : index
      %14 = vector.load %arg3[%c0_11, %c0_12] : memref<12x512xf32, #tpu.memory_space<vmem>>, vector<12x512xf32>
      %cst_13 = arith.constant dense<0.000000e+00> : vector<2x512xf32>
      %15 = tpu.matmul %13, %14, %cst_13 {dimension_numbers = #tpu.dot_dimension_numbers<[1], [0], [0], [1], [0, 0, 1, 1], [], []>} : vector<2x12xf32>, vector<12x512xf32>, vector<2x512xf32> -> vector<2x512xf32>
      %c0_14 = arith.constant 0 : index
      %c0_15 = arith.constant 0 : index
      %16 = vector.load %arg4[%c0_14, %c0_15] : memref<1x512xf32, #tpu.memory_space<vmem>>, vector<1x512xf32>
      %17 = vector.broadcast %16 : vector<1x512xf32> to vector<2x512xf32>
      %18 = arith.addf %15, %17 : vector<2x512xf32>
      %cst_16 = arith.constant 0.000000e+00 : f32
      %19 = vector.broadcast %cst_16 : f32 to vector<2x512xf32>
      %20 = arith.maximumf %18, %19 : vector<2x512xf32>
      %c0_17 = arith.constant 0 : index
      %c0_18 = arith.constant 0 : index
      %21 = vector.load %arg5[%c0_17, %c0_18] : memref<512x128xf32, #tpu.memory_space<vmem>>, vector<512x128xf32>
      %cst_19 = arith.constant dense<0.000000e+00> : vector<2x128xf32>
      %22 = tpu.matmul %20, %21, %cst_19 {dimension_numbers = #tpu.dot_dimension_numbers<[1], [0], [0], [1], [0, 0, 1, 1], [], []>} : vector<2x512xf32>, vector<512x128xf32>, vector<2x128xf32> -> vector<2x128xf32>
      %c0_20 = arith.constant 0 : index
      %c0_21 = arith.constant 0 : index
      %23 = vector.load %arg6[%c0_20, %c0_21] : memref<1x128xf32, #tpu.memory_space<vmem>>, vector<1x128xf32>
      %24 = vector.broadcast %23 : vector<1x128xf32> to vector<2x128xf32>
      %25 = arith.addf %22, %24 : vector<2x128xf32>
      %cst_22 = arith.constant 0.000000e+00 : f32
      %26 = vector.broadcast %cst_22 : f32 to vector<2x128xf32>
      %27 = arith.maximumf %25, %26 : vector<2x128xf32>
      %c0_23 = arith.constant 0 : index
      %c0_24 = arith.constant 0 : index
      %28 = vector.load %arg7[%c0_23, %c0_24] : memref<128x2xf32, #tpu.memory_space<vmem>>, vector<128x2xf32>
      %cst_25 = arith.constant dense<0.000000e+00> : vector<2x2xf32>
      %29 = tpu.matmul %27, %28, %cst_25 {dimension_numbers = #tpu.dot_dimension_numbers<[1], [0], [0], [1], [0, 0, 1, 1], [], []>} : vector<2x128xf32>, vector<128x2xf32>, vector<2x2xf32> -> vector<2x2xf32>
      %c0_26 = arith.constant 0 : index
      %c0_27 = arith.constant 0 : index
      %30 = vector.load %arg8[%c0_26, %c0_27] : memref<1x2xf32, #tpu.memory_space<vmem>>, vector<1x2xf32>
      %31 = vector.broadcast %30 : vector<1x2xf32> to vector<2x2xf32>
      %32 = arith.addf %29, %31 : vector<2x2xf32>
      %c0_28 = arith.constant 0 : index
      %c0_29 = arith.constant 0 : index
      %33 = vector.load %arg9[%c0_28, %c0_29] : memref<2x2xf32, #tpu.memory_space<vmem>>, vector<2x2xf32>
      tpu.vector_store %arg9[%c0_28, %c0_29], %32 {strides = array<i32>} : memref<2x2xf32, #tpu.memory_space<vmem>>, vector<2x2xf32>,
    } else {
    }
    return
  }
  func.func @transform_0(%arg0: i32, %arg1: i32) -> (i32, i32, i32) {
    %c0_i32 = arith.constant 0 : i32
    %c0_i32_0 = arith.constant 0 : i32
    return %arg0, %c0_i32, %arg1 : i32, i32, i32
  }
  func.func @transform_1(%arg0: i32, %arg1: i32) -> (i32, i32) {
    %c0_i32 = arith.constant 0 : i32
    %c0_i32_0 = arith.constant 0 : i32
    %c0_i32_1 = arith.constant 0 : i32
    return %c0_i32, %c0_i32_0 : i32, i32
  }
  func.func @transform_2(%arg0: i32, %arg1: i32) -> (i32, i32) {
    %c0_i32 = arith.constant 0 : i32
    %c0_i32_0 = arith.constant 0 : i32
    %c0_i32_1 = arith.constant 0 : i32
    return %c0_i32, %c0_i32_0 : i32, i32
  }
  func.func @transform_3(%arg0: i32, %arg1: i32) -> (i32, i32) {
    %c0_i32 = arith.constant 0 : i32
    %c0_i32_0 = arith.constant 0 : i32
    %c0_i32_1 = arith.constant 0 : i32
    return %c0_i32, %c0_i32_0 : i32, i32
  }
  func.func @transform_4(%arg0: i32, %arg1: i32) -> (i32, i32) {
    %c0_i32 = arith.constant 0 : i32
    %c0_i32_0 = arith.constant 0 : i32
    %c0_i32_1 = arith.constant 0 : i32
    return %c0_i32, %c0_i32_0 : i32, i32
  }
  func.func @transform_5(%arg0: i32, %arg1: i32) -> (i32, i32) {
    %c0_i32 = arith.constant 0 : i32
    %c0_i32_0 = arith.constant 0 : i32
    %c0_i32_1 = arith.constant 0 : i32
    return %c0_i32, %c0_i32_0 : i32, i32
  }
  func.func @transform_6(%arg0: i32, %arg1: i32) -> (i32, i32) {
    %c0_i32 = arith.constant 0 : i32
    %c0_i32_0 = arith.constant 0 : i32
    %c0_i32_1 = arith.constant 0 : i32
    return %c0_i32, %c0_i32_0 : i32, i32
  }
  func.func @transform_7(%arg0: i32, %arg1: i32) -> (i32, i32) {
    %c0_i32 = arith.constant 0 : i32
    %c0_i32_0 = arith.constant 0 : i32
    return %arg0, %c0_i32 : i32, i32
  }
}

</mosaic_0001>

<bundles_post_ra>
// kernel: video_frames_joint.1
= control target key start
LH: loop header
LB: loop body
LE: loop exit
PB: predicated region body
PF: predicated region fallthrough
CT: control target
= control target key end

     0   :  { %12 = vsyncpa [#allocation5], 0  ;;  %s1266_s24 = smov 0   ;;  %s1268_s25 = smov 0   ;;  %s1655_s0 = inlined_call_operand.vmem [shape: f32[2,12,256], index: 0, kind: input, shape index: {}]   ;;  %s1656_s1 = inlined_call_operand.vmem [shape: f32[12,512], index: 1, kind: input, shape index: {}]   ;;  %s1657_s2 = inlined_call_operand.vmem [shape: f32[1,512], index: 2, kind: input, shape index: {}]   ;;  %s1658_s3 = inlined_call_operand.vmem [shape: f32[512,128], index: 3, kind: input, shape index: {}]   ;;  %s1659_s4 = inlined_call_operand.vmem [shape: f32[1,128], index: 4, kind: input, shape index: {}]   ;;  %s1660_s5 = inlined_call_operand.vmem [shape: f32[128,2], index: 5, kind: input, shape index: {}]   ;;  %s1661_s6 = inlined_call_operand.vmem [shape: f32[1,2], index: 6, kind: input, shape index: {}]   ;;  %s1662_s7 = inlined_call_operand.hbm [shape: f32[2,2], index: 7, kind: output, shape index: {}]  }
   0x1   :  { %s1270_s26 = smov 0   ;;  %s1272_s27 = smov 0  }
   0x2   :  { %s1274_s28 = smov 0  }
   0x3 LB: > { %s961_s29 = sadd.s32 4294967295, %s1220_s28   ;;  %s27_s30 = sadd.s32 1, %s1216_s27  ;;  %s1220_s28 = sphi %s1274_s28, %s18_s28   ;;  %s1216_s27 = sphi %s1272_s27, %s1667_s27   ;;  %s1212_s26 = sphi %s1270_s26, %s1666_s26   ;;  %s1208_s25 = sphi %s1268_s25, %s1665_s25   ;;  %s1204_s24 = sphi %s1266_s24, %s1664_s24  }
   0x4   : > { %p28_p0 = scmp.ge.s32.totalorder %s27_s30, 2  ;;  %p46_p1 = scmp.ne.s32.totalorder %s1208_s25, %s1204_s24 }
   0x5   : > { %p47_p2 = scmp.eq.s32.totalorder %s1220_s28, 0  ;;  %s39_s9 = sadd.s32 1, %s1208_s25 }
   0x6   : > { %s1669_s30 = smov (%p28_p0, %s27_s30), 0  ;;  %p963_p5 = scmp.ge.s32.totalorder %s1220_s28, 2 }
   0x7   : > { %p48_p3 = por %p47_p2, %p46_p1  ;;  %s35_s8 = ssub.s32 %s1216_s27, %s1669_s30 }
   0x8   : > { %p37_p4 = scmp.eq.s32.totalorder %s35_s8, 0  ;;  %242 = sbr.rel (%p963_p5) target bundleno = 19 (0x13), region = 40 }
   0xa   : > { %s1302_s10 = scalar_select %p37_p4, %s1208_s25, %s39_s9  }
   0xd   : > { %245 = sbr.rel (!%p48_p3) target bundleno = 19 (0x13), region = 44  ;;  %s247_s11 = sand.u32 (%p48_p3), 1, %s1208_s25  }
   0xe   : > { %s965_s12 = sshll.u32 (%p48_p3), %s1216_s27, 3  ;;  %s964_s13 = sshll.u32 (%p48_p3), %s247_s11, 5 }
   0xf   : > { %s254_s16 = scalar_lea.vmem (%p48_p3), %s1655_s0, %s965_s12  ;;  %s249_s17 = scalar_lea.vmem (%p48_p3), [#allocation3], %s964_s13 }
  0x10   : > { %v289_v0 = vld [vmem:[%s254_s16] sm:$0xff] (%p48_p3)  ;;  %v291_v1 = vld [vmem:[%s254_s16 + $0x10] sm:$0xff] (%p48_p3) }
  0x11   : > { %v293_v2 = vld [vmem:[%s254_s16 + $0x20] sm:$0xff] (%p48_p3)  ;;  %290 = vst [vmem:[%s249_s17] sm:$0xff] (%p48_p3), %v289_v0  ;;  %292 = vst [vmem:[%s249_s17 + $0x8] sm:$0xff] (%p48_p3), %v291_v1  ;;  %v295_v3 = vld [vmem:[%s254_s16 + $0x30] sm:$0xff] (%p48_p3) }
  0x12   : > { %294 = vst [vmem:[%s249_s17 + $0x10] sm:$0xff] %v293_v2  ;;  %296 = vst [vmem:[%s249_s17 + $0x18] sm:$0xff] %v295_v3 }
  0x13 PF: > { %p966_p6 = scmp.ge.s32.totalorder %s1220_s28, 1  ;;  %p301_p7 = scmp.lt.s32.totalorder %s1220_s28, 3 }
  0x15   : > { %p302_p8 = pnand %p966_p6, %p301_p7 }
  0x16   : > { %s308_s18 = sand.u32 (!%p302_p8), 1, %s1204_s24   ;;  %p968_p9 = scmp.ne.s32.totalorder (!%p302_p8), %s1212_s26, 0 }
  0x17   : > { %305 = sbr.rel (%p302_p8) target bundleno = 810 (0x32a), region = 82  ;;  %s967_s19 = sshll.u32 (!%p302_p8), %s308_s18, 5 }
  0x18   : > { %s310_s20 = scalar_lea.vmem (!%p302_p8), [#allocation3], %s967_s19 }
  0x1c   : > { %338 = sbr.rel (%p968_p9) target bundleno = 35 (0x23), region = 90 }
  0x21   : > { %vm339_vm0 = vcmask 91136   ;;  %v1222_v4 = vmov 0.0  }
  0x22   : > { %340 = vst.msk [vmem:[#allocation2] sm:$0x3] %vm339_vm0, %v1222_v4 }
  0x23 PF: > { %v344_v5 = vld [vmem:[%s310_s20 + $0x10] sm:$0xff]  ;;  %v342_v6 = vld [vmem:[%s310_s20] sm:$0xff]  ;;  %v345_v7 = vld [vmem:[%s310_s20 + $0x18] sm:$0xf]  ;;  %vm348_vm1 = vcmask 1043456   ;;  %v361_v11 = vlaneseq  ;;  %vm372_vm2 = vcmask 130112  }
  0x24   : > { %352 = vadd.xlane.f32.xlu1 %v344_v5  ;;  %346 = vadd.xlane.f32.xlu0 %v342_v6  ;;  %v343_v8 = vld [vmem:[%s310_s20 + $0x8] sm:$0xf]  ;;  %v354_v9 = vsel %vm348_vm1, %v345_v7, 0.0  ;;  %vm383_vm3 = vcmask 1041409   ;;  %vm387_vm4 = vcmask 91136   ;;  %p969_p10 = scmp.ne.s32.totalorder %s1212_s26, 1 }
  0x25   : > { %v349_v10 = vsel %vm348_vm1, %v343_v8, 0.0  ;;  %v362_v12 = vand.u32 127, %v361_v11  ;;  %v1316_v13 = vshrl.u32 %v361_v11, 7 }
  0x27   : > { %v367_v14 = vadd.s32 4294967288, %v362_v12  ;;  %v365_v17 = vsub.s32 %v362_v12, %v1316_v13 }
  0x28   : > { %355 = vadd.xlane.f32.xlu1 %v354_v9  ;;  %350 = vadd.xlane.f32.xlu0 %v349_v10 }
  0x29   : > { %v370_v18 = vsub.s32 %v367_v14, %v1316_v13  ;;  %v341_v25 = vld [vmem:[#allocation2] sm:$0x3] }
  0xad   : > { %v353_v15 = vpop.xlane.xlu1 %352  ;;  %v347_v16 = vpop.xlane.xlu0 %346 }
  0xae   : > { %v377_v21 = vrot.slane %v353_v15, %v365_v17  ;;  %v366_v22 = vrot.slane %v347_v16, %v365_v17 }
  0xb1   : > { %v356_v19 = vpop.xlane.xlu1 %355  ;;  %v351_v20 = vpop.xlane.xlu0 %350 }
  0xb2   : > { %v381_v23 = vrot.slane %v356_v19, %v370_v18  ;;  %v371_v24 = vrot.slane %v351_v20, %v370_v18 }
  0xb4   : > { %v382_v26 = vsel %vm372_vm2, %v381_v23, %v377_v21  ;;  %v373_v27 = vsel %vm372_vm2, %v371_v24, %v366_v22  ;;  %392 = sbr.rel (%p969_p10) target bundleno = 795 (0x31b), region = 94 }
  0xb5   : > { %v384_v28 = vsel %vm383_vm3, %v382_v26, %v373_v27 }
  0xb6   : > { %v386_v29 = vadd.f32 %v384_v28, %v341_v25 }
  0xb8   : > { %388 = vst.msk [vmem:[#allocation2] sm:$0x3] %vm387_vm4, %v386_v29 }
  0xb9   : > { %v400_v30 = vld [vmem:[%s1656_s1 + $0x28] sm:$0xf]  ;;  %v399_v31 = vld [vmem:[%s1656_s1 + $0x20] sm:$0xf]  ;;  %v1223_v34 = vmov 0.0   ;;  %vm425_vm5 = vcmask 97280  }
  0xba   : > { %v396_v32 = vld [vmem:[%s1656_s1 + $0x8] sm:$0xff]  ;;  %970 = vmatprep.subr.msk.mxu1 %vm348_vm1, %v400_v30  ;;  %v395_v33 = vld [vmem:[%s1656_s1] sm:$0xff]  ;;  %505 = vmatprep.mubr.f32.mxu1 %v1223_v34  ;;  %v402_v37 = vld [vmem:[%s1656_s1 + $0x38] sm:$0xf]  ;;  %vm1224_vm6 = vmmov 0   ;;  %vm892_vm7 = vcmask 9216  }
  0xbb   : > { %971 = vmatpush1.msk.msra.mxu1 %vm348_vm1, %v399_v31  ;;  %v401_v38 = vld [vmem:[%s1656_s1 + $0x30] sm:$0xf]  ;;  %v618_v39 = vld [vmem:[%s1658_s3 + $0xf8] sm:$0xff]  ;;  %v616_v45 = vld [vmem:[%s1658_s3 + $0xe8] sm:$0xff] }
  0xbc   : > { %471 = vmatprep.subr.mxu1 %v396_v32  ;;  %v398_v40 = vld [vmem:[%s1656_s1 + $0x18] sm:$0xff]  ;;  %982 = vmatprep.subr.mxu0 %v618_v39  ;;  %v397_v42 = vld [vmem:[%s1656_s1 + $0x10] sm:$0xff]  ;;  %v600_v47 = vld [vmem:[%s1658_s3 + $0x68] sm:$0xff] }
  0xbd   : > { %472 = vmatpush1.msra.mxu1 %v395_v33  ;;  %v602_v41 = vld [vmem:[%s1658_s3 + $0x78] sm:$0xff]  ;;  %v617_v43 = vld [vmem:[%s1658_s3 + $0xf0] sm:$0xff]  ;;  %v615_v49 = vld [vmem:[%s1658_s3 + $0xe0] sm:$0xff] }
  0xbe   : > { %973 = vmatprep.subr.msk.mxu1 %vm348_vm1, %v402_v37  ;;  %v601_v44 = vld [vmem:[%s1658_s3 + $0x70] sm:$0xff]  ;;  %983 = vmatpush3.msra.mxu0 %v602_v41  ;;  %v650_v46 = vld [vmem:[%s1658_s3 + $0x1f8] sm:$0xff]  ;;  %v599_v51 = vld [vmem:[%s1658_s3 + $0x60] sm:$0xff] }
  0xbf   : > { %v393_v35 = vld [vmem:[#allocation2] sm:$0x3]  ;;  %984 = vmatprep.subr.mxu0 %v617_v43  ;;  %v634_v48 = vld [vmem:[%s1658_s3 + $0x178] sm:$0xff]  ;;  %v649_v50 = vld [vmem:[%s1658_s3 + $0x1f0] sm:$0xff]  ;;  %v407_v43 = vsub.s32 0, %v1316_v13 }
  0xc0   : > { %v394_v36 = vmul.f32 0.00390625, %v393_v35  ;;  %985 = vmatpush3.msra.mxu0 %v601_v44  ;;  %v633_v52 = vld [vmem:[%s1658_s3 + $0x170] sm:$0xff]  ;;  %v614_v53 = vld [vmem:[%s1658_s3 + $0xd8] sm:$0xff]  ;;  %v648_v54 = vld [vmem:[%s1658_s3 + $0x1e8] sm:$0xff] }
  0xc1   : > { %986 = vmatprep.subr.mxu0 %v616_v45  ;;  %v598_v55 = vld [vmem:[%s1658_s3 + $0x58] sm:$0xff]  ;;  %v632_v56 = vld [vmem:[%s1658_s3 + $0x168] sm:$0xff]  ;;  %v613_v57 = vld [vmem:[%s1658_s3 + $0xd0] sm:$0xff]  ;;  %v411_v45 = vsub.s32 1, %v1316_v13 }
  0xc2   : > { %972 = vmatmul.mubr.msk.f32.vlgmr.msra.gmra.mxu1 %vm425_vm5, %v394_v36  ;;  %987 = vmatpush3.msra.mxu0 %v600_v47  ;;  %v647_v58 = vld [vmem:[%s1658_s3 + $0x1e0] sm:$0xff]  ;;  %v597_v59 = vld [vmem:[%s1658_s3 + $0x50] sm:$0xff]  ;;  %v612_v61 = vld [vmem:[%s1658_s3 + $0xc8] sm:$0xff]  ;;  %v415_v47 = vsub.s32 2, %v1316_v13 }
  0xc3   : > { %974 = vmatpush1.msk.msra.mxu1 %vm348_vm1, %v401_v38  ;;  %576 = vmatprep.mubr.f32.mxu1 %v1223_v34  ;;  %v631_v60 = vld [vmem:[%s1658_s3 + $0x160] sm:$0xff]  ;;  %v646_v62 = vld [vmem:[%s1658_s3 + $0x1d8] sm:$0xff]  ;;  %v596_v63 = vld [vmem:[%s1658_s3 + $0x48] sm:$0xff] }
  0xc4   : > { %542 = vmatprep.subr.mxu1 %v398_v40  ;;  %988 = vmatprep.subr.mxu0 %v615_v49  ;;  %v630_v0 = vld [vmem:[%s1658_s3 + $0x158] sm:$0xff]  ;;  %v611_v1 = vld [vmem:[%s1658_s3 + $0xc0] sm:$0xff]  ;;  %v645_v2 = vld [vmem:[%s1658_s3 + $0x1d0] sm:$0xff] }
  0xc5   : > { %543 = vmatpush1.msra.mxu1 %v397_v42  ;;  %989 = vmatpush3.msra.mxu0 %v599_v51  ;;  %v595_v3 = vld [vmem:[%s1658_s3 + $0x40] sm:$0xff]  ;;  %v629_v4 = vld [vmem:[%s1658_s3 + $0x150] sm:$0xff]  ;;  %v610_v5 = vld [vmem:[%s1658_s3 + $0xb8] sm:$0xff] }
  0xc6   : > { %975 = vmatmul.mubr.msk.f32.vlgmr.msra.gmra.mxu1 %vm425_vm5, %v394_v36  ;;  %1017 = vmatprep.subr.mxu1 %v650_v46  ;;  %v644_v6 = vld [vmem:[%s1658_s3 + $0x1c8] sm:$0xff]  ;;  %v594_v7 = vld [vmem:[%s1658_s3 + $0x38] sm:$0xff]  ;;  %v609_v9 = vld [vmem:[%s1658_s3 + $0xb0] sm:$0xff] }
  0xc7   : > { %1018 = vmatpush3.msra.mxu1 %v634_v48  ;;  %990 = vmatprep.subr.mxu0 %v614_v53  ;;  %v628_v8 = vld [vmem:[%s1658_s3 + $0x148] sm:$0xff]  ;;  %v643_v10 = vld [vmem:[%s1658_s3 + $0x1c0] sm:$0xff]  ;;  %v593_v11 = vld [vmem:[%s1658_s3 + $0x30] sm:$0xff]  ;;  %v419_v48 = vsub.s32 3, %v1316_v13 }
  0xc8   : > { %1019 = vmatprep.subr.mxu1 %v649_v50  ;;  %991 = vmatpush3.msra.mxu0 %v598_v55  ;;  %v627_v12 = vld [vmem:[%s1658_s3 + $0x140] sm:$0xff]  ;;  %v608_v14 = vld [vmem:[%s1658_s3 + $0xa8] sm:$0xff]  ;;  %v642_v15 = vld [vmem:[%s1658_s3 + $0x1b8] sm:$0xff] }
  0xc9   : > { %1020 = vmatpush3.msra.mxu1 %v633_v52  ;;  %992 = vmatprep.subr.mxu0 %v613_v57  ;;  %v592_v16 = vld [vmem:[%s1658_s3 + $0x28] sm:$0xff]  ;;  %v626_v17 = vld [vmem:[%s1658_s3 + $0x138] sm:$0xff]  ;;  %v607_v18 = vld [vmem:[%s1658_s3 + $0xa0] sm:$0xff] }
  0xca   : > { %1021 = vmatprep.subr.mxu1 %v648_v54  ;;  %993 = vmatpush3.msra.mxu0 %v597_v59  ;;  %v641_v19 = vld [vmem:[%s1658_s3 + $0x1b0] sm:$0xff]  ;;  %v591_v20 = vld [vmem:[%s1658_s3 + $0x20] sm:$0xff]  ;;  %v606_v22 = vld [vmem:[%s1658_s3 + $0x98] sm:$0xff] }
  0xcb   : > { %1022 = vmatpush3.msra.mxu1 %v632_v56  ;;  %994 = vmatprep.subr.mxu0 %v612_v61  ;;  %v625_v21 = vld [vmem:[%s1658_s3 + $0x130] sm:$0xff]  ;;  %v640_v23 = vld [vmem:[%s1658_s3 + $0x1a8] sm:$0xff]  ;;  %v590_v24 = vld [vmem:[%s1658_s3 + $0x18] sm:$0xff] }
  0xcc   : > { %1023 = vmatprep.subr.mxu1 %v647_v58  ;;  %995 = vmatpush3.msra.mxu0 %v596_v63  ;;  %v624_v25 = vld [vmem:[%s1658_s3 + $0x128] sm:$0xff]  ;;  %v605_v26 = vld [vmem:[%s1658_s3 + $0x90] sm:$0xff]  ;;  %v639_v27 = vld [vmem:[%s1658_s3 + $0x1a0] sm:$0xff] }
  0xcd   : > { %1024 = vmatpush3.msra.mxu1 %v631_v60  ;;  %996 = vmatprep.subr.mxu0 %v611_v1  ;;  %v589_v28 = vld [vmem:[%s1658_s3 + $0x10] sm:$0xff]  ;;  %v623_v29 = vld [vmem:[%s1658_s3 + $0x120] sm:$0xff]  ;;  %v604_v30 = vld [vmem:[%s1658_s3 + $0x88] sm:$0xff] }
  0xce   : > { %1025 = vmatprep.subr.mxu1 %v646_v62  ;;  %997 = vmatpush3.msra.mxu0 %v595_v3  ;;  %v638_v31 = vld [vmem:[%s1658_s3 + $0x198] sm:$0xff]  ;;  %v588_v32 = vld [vmem:[%s1658_s3 + $0x8] sm:$0xff]  ;;  %v603_v35 = vld [vmem:[%s1658_s3 + $0x80] sm:$0xff] }
  0xcf   : > { %1026 = vmatpush3.msra.mxu1 %v630_v0  ;;  %998 = vmatprep.subr.mxu0 %v610_v5  ;;  %v622_v33 = vld [vmem:[%s1658_s3 + $0x118] sm:$0xff]  ;;  %v637_v36 = vld [vmem:[%s1658_s3 + $0x190] sm:$0xff]  ;;  %v587_v37 = vld [vmem:[%s1658_s3] sm:$0xff] }
  0xd0   : > { %1027 = vmatprep.subr.mxu1 %v645_v2  ;;  %999 = vmatpush3.msra.mxu0 %v594_v7  ;;  %v621_v38 = vld [vmem:[%s1658_s3 + $0x110] sm:$0xff]  ;;  %v636_v39 = vld [vmem:[%s1658_s3 + $0x188] sm:$0xff]  ;;  %v635_v41 = vld [vmem:[%s1658_s3 + $0x180] sm:$0xff] }
  0xd1   : > { %1028 = vmatpush3.msra.mxu1 %v629_v4  ;;  %1000 = vmatprep.subr.mxu0 %v609_v9  ;;  %v620_v40 = vld [vmem:[%s1658_s3 + $0x108] sm:$0xff]  ;;  %v619_v42 = vld [vmem:[%s1658_s3 + $0x100] sm:$0xff]  ;;  %v814_v61 = vld [vmem:[%s1660_s5 + $0x78] sm:$0xff] }
  0xd2   : > { %1029 = vmatprep.subr.mxu1 %v644_v6  ;;  %1001 = vmatpush3.msra.mxu0 %v593_v11  ;;  %v403_v44 = vld [vmem:[%s1657_s2] sm:$0xf]  ;;  %v813_v13 = vld [vmem:[%s1660_s5 + $0x70] sm:$0xff]  ;;  %v812_v1 = vld [vmem:[%s1660_s5 + $0x68] sm:$0xff] }
  0xd3   : > { %1030 = vmatpush3.msra.mxu1 %v628_v8  ;;  %1002 = vmatprep.subr.mxu0 %v608_v14  ;;  %v408_v46 = vrot.slane %v403_v44, %v407_v43  ;;  %v412_v49 = vrot.slane %v403_v44, %v411_v45  ;;  %v416_v53 = vrot.slane %v403_v44, %v415_v47  ;;  %v811_v2 = vld [vmem:[%s1660_s5 + $0x60] sm:$0xff]  ;;  %v810_v3 = vld [vmem:[%s1660_s5 + $0x58] sm:$0xff]  ;;  %v809_v4 = vld [vmem:[%s1660_s5 + $0x50] sm:$0xff] }
  0xd4   : > { %1031 = vmatprep.subr.mxu1 %v643_v10  ;;  %1003 = vmatpush3.msra.mxu0 %v592_v16  ;;  %v420_v54 = vrot.slane %v403_v44, %v419_v48  ;;  %v808_v5 = vld [vmem:[%s1660_s5 + $0x48] sm:$0xff]  ;;  %v807_v6 = vld [vmem:[%s1660_s5 + $0x40] sm:$0xff]  ;;  %v806_v7 = vld [vmem:[%s1660_s5 + $0x38] sm:$0xff] }
  0xd5   : > { %1032 = vmatpush3.msra.mxu1 %v627_v12  ;;  %1004 = vmatprep.subr.mxu0 %v607_v18  ;;  %v805_v8 = vld [vmem:[%s1660_s5 + $0x30] sm:$0xff]  ;;  %v804_v9 = vld [vmem:[%s1660_s5 + $0x28] sm:$0xff]  ;;  %v803_v10 = vld [vmem:[%s1660_s5 + $0x20] sm:$0xff] }
  0xd6   : > { %1033 = vmatprep.subr.mxu1 %v642_v15  ;;  %1005 = vmatpush3.msra.mxu0 %v591_v20  ;;  %v802_v11 = vld [vmem:[%s1660_s5 + $0x18] sm:$0xff]  ;;  %v801_v12 = vld [vmem:[%s1660_s5 + $0x10] sm:$0xff]  ;;  %v800_v14 = vld [vmem:[%s1660_s5 + $0x8] sm:$0xff] }
  0xd7   : > { %1034 = vmatpush3.msra.mxu1 %v626_v17  ;;  %1006 = vmatprep.subr.mxu0 %v606_v22  ;;  %v799_v15 = vld [vmem:[%s1660_s5] sm:$0xff] }
  0xd8   : > { %1035 = vmatprep.subr.mxu1 %v641_v19  ;;  %1007 = vmatpush3.msra.mxu0 %v590_v24  ;;  %v976_v19 = vld [vmem:[%s1659_s4] ss:$0 sm:$0xff] }
  0xd9   : > { %1036 = vmatpush3.msra.mxu1 %v625_v21  ;;  %1008 = vmatprep.subr.mxu0 %v605_v26  ;;  %v977_v26 = vld [vmem:[%s1661_s6] ss:$0 sm:$0xff] }
  0xda   : > { %1037 = vmatprep.subr.mxu1 %v640_v23  ;;  %1009 = vmatpush3.msra.mxu0 %v589_v28 }
  0xdb   : > { %1038 = vmatpush3.msra.mxu1 %v624_v25  ;;  %1010 = vmatprep.subr.mxu0 %v604_v30 }
  0xdc   : > { %1039 = vmatprep.subr.mxu1 %v639_v27  ;;  %1011 = vmatpush3.msra.mxu0 %v588_v32 }
  0xdd   : > { %1040 = vmatpush3.msra.mxu1 %v623_v29  ;;  %1012 = vmatprep.subr.mxu0 %v603_v35 }
  0xde   : > { %1041 = vmatprep.subr.mxu1 %v638_v31  ;;  %1013 = vmatpush3.msra.mxu0 %v587_v37 }
  0xdf   : > { %1042 = vmatpush3.msra.mxu1 %v622_v33  ;;  %1069 = vmatprep.subr.mxu0 %v1223_v34 }
  0xe0   : > { %1043 = vmatprep.subr.mxu1 %v637_v36 }
  0xe1   : > { %1044 = vmatpush3.msra.mxu1 %v621_v38 }
  0xe2   : > { %1045 = vmatprep.subr.mxu1 %v636_v39 }
  0xe3   : > { %1046 = vmatpush3.msra.mxu1 %v620_v40 }
  0xe4   : > { %1047 = vmatprep.subr.mxu1 %v635_v41 }
  0xe5   : > { %1048 = vmatpush3.msra.mxu1 %v619_v42 }
 0x182   : > { %v507_v50 = vpop.f32.mrf.mxu1 }
 0x183   : > { %v508_v51 = vadd.f32 %v507_v50, %v408_v46 }
 0x184   : > { %v509_v52 = vpop.f32.mrf.mxu1 }
 0x185   : > { %v510_v55 = vadd.f32 %v509_v52, %v412_v49  ;;  %v583_v58 = vmax.f32 %v508_v51, 0.0 }
 0x186   : > { %v578_v56 = vpop.f32.mrf.mxu1 }
 0x187   : > { %v584_v57 = vmax.f32 %v510_v55, 0.0  ;;  %v579_v59 = vadd.f32 %v578_v56, %v416_v53 }
 0x188   : > { %v580_v60 = vpop.f32.mrf.mxu1 }
 0x189   : > { %v581_v62 = vadd.f32 %v580_v60, %v420_v54  ;;  %722 = vmatprep.mubr.f32.mxu0 %v584_v57  ;;  %v585_v0 = vmax.f32 %v579_v59, 0.0 }
 0x18a   : > { %723 = vmatmul.mubr.f32.vlgmr.msra.gmra.mxu0 %v583_v58 }
 0x18b   : > { %v586_v63 = vmax.f32 %v581_v62, 0.0  ;;  %1070 = vmatpush3.msra.mxu0 %v814_v61  ;;  %1101 = vmatprep.mubr.msk.f32.mxu0 %vm1224_vm6, %v1223_v34 }
 0x18c   : > { %1071 = vmatprep.subr.mxu0 %v1223_v34 }
 0x18d   : > { %792 = vmatprep.mubr.f32.mxu1 %v586_v63  ;;  %1072 = vmatpush3.msra.mxu0 %v813_v13 }
 0x18e   : > { %793 = vmatmul.mubr.f32.vlgmr.msra.gmra.mxu1 %v585_v0  ;;  %1073 = vmatprep.subr.mxu0 %v1223_v34 }
 0x18f   : > { %1074 = vmatpush3.msra.mxu0 %v812_v1 }
 0x190   : > { %1075 = vmatprep.subr.mxu0 %v1223_v34 }
 0x191   : > { %1076 = vmatpush3.msra.mxu0 %v811_v2 }
 0x192   : > { %1077 = vmatprep.subr.mxu0 %v1223_v34 }
 0x193   : > { %1078 = vmatpush3.msra.mxu0 %v810_v3 }
 0x194   : > { %1079 = vmatprep.subr.mxu0 %v1223_v34 }
 0x195   : > { %1080 = vmatpush3.msra.mxu0 %v809_v4 }
 0x196   : > { %1081 = vmatprep.subr.mxu0 %v1223_v34 }
 0x197   : > { %1082 = vmatpush3.msra.mxu0 %v808_v5 }
 0x198   : > { %1083 = vmatprep.subr.mxu0 %v1223_v34 }
 0x199   : > { %1084 = vmatpush3.msra.mxu0 %v807_v6 }
 0x19a   : > { %1085 = vmatprep.subr.mxu0 %v1223_v34 }
 0x19b   : > { %1086 = vmatpush3.msra.mxu0 %v806_v7 }
 0x19c   : > { %1087 = vmatprep.subr.mxu0 %v1223_v34 }
 0x19d   : > { %1088 = vmatpush3.msra.mxu0 %v805_v8 }
 0x19e   : > { %1089 = vmatprep.subr.mxu0 %v1223_v34 }
 0x19f   : > { %1090 = vmatpush3.msra.mxu0 %v804_v9 }
 0x1a0   : > { %1091 = vmatprep.subr.mxu0 %v1223_v34 }
 0x1a1   : > { %1092 = vmatpush3.msra.mxu0 %v803_v10 }
 0x1a2   : > { %1093 = vmatprep.subr.mxu0 %v1223_v34 }
 0x1a3   : > { %1094 = vmatpush3.msra.mxu0 %v802_v11 }
 0x1a4   : > { %1095 = vmatprep.subr.mxu0 %v1223_v34 }
 0x1a5   : > { %1096 = vmatpush3.msra.mxu0 %v801_v12 }
 0x1a6   : > { %1097 = vmatprep.subr.mxu0 %v1223_v34 }
 0x1a7   : > { %1098 = vmatpush3.msra.mxu0 %v800_v14 }
 0x1a8   : > { %1099 = vmatprep.subr.mxu0 %v1223_v34 }
 0x1a9   : > { %1100 = vmatpush3.msra.mxu0 %v799_v15 }
 0x24a   : > { %v1014_v16 = vpop.f32.mrf.mxu0 }
 0x24c   : > { %v1015_v17 = vpop.f32.mrf.mxu0 }
 0x24d   : > { %v1016_v18 = vadd.f32 %v1015_v17, %v1014_v16 }
 0x24e   : > { %v1049_v20 = vpop.f32.mrf.mxu1 }
 0x24f   : > { %v725_v22 = vadd.f32 %v1016_v18, %v976_v19 }
 0x250   : > { %v1050_v21 = vpop.f32.mrf.mxu1 }
 0x251   : > { %v1051_v23 = vadd.f32 %v1050_v21, %v1049_v20 }
 0x253   : > { %v795_v24 = vadd.f32 %v1051_v23, %v725_v22 }
 0x255   : > { %v798_v25 = vmax.f32 %v795_v24, 0.0 }
 0x257   : > { %1102 = vmatmul.mubr.f32.vlgmr.msra.gmra.mxu0 %v798_v25 }
 0x317   : > { %v888_v27 = vpop.f32.mrf.mxu0 }
 0x318   : > { %v889_v34 = vadd.f32 %v977_v26, %v888_v27 }
 0x319   : > { %v1103_v28 = vpop.f32.mrf.mxu0 }
 0x31a   : > { %893 = vst.msk [vmem:[#allocation4] sm:$0x3] %vm892_vm7, %v889_v34 }
 0x31b PF: > { %p1625_p11 = scmp.eq.s32.totalorder %s961_s29, 1  ;;  %s1225_s17 = smov [#allocation4]  }
 0x31c   : > { %s903_s18 = sshll.u32 %s1225_s17, 4  ;;  %s904_s18 = int_to_ptr.vmem [resolvable:$true] %s903_s18 }
 0x31d   : > { %s1154_s19 = scalar_lea.vmem %s904_s18, 32  ;;  %p1161_p1 = scmp.lt.s32.totalorder %s904_s18, %s904_s18 }
 0x31e   : > { %p1155_p12 = scmp.ne.s32.totalorder %s904_s18, %s1154_s19  ;;  %p1162_p2 = scmp.lt.s32.totalorder %s1154_s19, %s1154_s19 }
 0x320   : > { %p1156_p13 = pnand %p1155_p12, %p1625_p11  ;;  %p1163_p3 = por %p1162_p2, %p1161_p1 }
 0x322   : > { %p1157_p0 = pneg %p1156_p13 }
 0x324   : > { %p1164_p4 = pnand %p1163_p3, %p1157_p0 }
 0x326   : > { %1167 = shalt.err (!%p1164_p4)
}
 0x327   : > { %1105 = dma.vmem_to_hbm [thread:$0]  (%p1625_p11), %s904_s18, 32, %s1662_s7, [#allocation5]  }
 0x328   : > { %1199 = dma.done.wait (%p1625_p11), [#allocation5], 32  }
 0x329   : > { %1201 = vsyncadd (%p1625_p11), [#allocation5], 4294967264 }
 0x32a PF: > { %s18_s28 = sadd.s32 1, %s1220_s28   ;;  %s1664_s24 = smov %s1208_s25 }
 0x32b   : > { %p15_p5 = scmp.ge.s32.totalorder %s18_s28, 4   ;;  %s1665_s25 = smov %s1302_s10 }
 0x32c   : > { %s1666_s26 = smov %s1216_s27  ;;  %s1667_s27 = smov %s1669_s30 }
 0x32d   :  { %17 = sbr.rel (!%p15_p5) target bundleno = 3 (0x3), region = 127 }
 0x332   :  { %916 = vsyncpa [#allocation5], 1 }
 0x333   :  { %918 = vsyncpa [#allocation5 + $0x1], 1 }

</bundles_post_ra>
